<compile_context>
chip_gen: v7x
topology: tpu7x:2x2x1
jax: 0.10.0
libtpu: 0.0.40
codegen_flags: <defaults>
</compile_context>

<pallas_src>
import math

import jax
import jax.numpy as jnp
from jax.experimental import pallas as pl
from jax.experimental.pallas import tpu as pltpu


_MAX_DMA_CHUNKS = 8           # spread large copies across several DMA engines
_MIN_CHUNK_BYTES = 1 << 20    # don't split copies smaller than ~1 MiB/chunk


def _row_chunks(num_rows, row_bytes):
    """Static (start, size) ranges along axis 0 for chunked HBM->HBM DMA."""
    total_bytes = num_rows * row_bytes
    n = max(1, min(_MAX_DMA_CHUNKS, num_rows, total_bytes // _MIN_CHUNK_BYTES))
    base = -(-num_rows // n)  # ceil division
    chunks = []
    start = 0
    while start < num_rows:
        size = min(base, num_rows - start)
        chunks.append((start, size))
        start += size
    return tuple(chunks)


def _make_hbm_copy_kernel(chunks):
    """Kernel: chunked direct HBM->HBM DMA (no VMEM staging, no grid)."""

    def kernel(x_ref, o_ref, sem):
        copies = [
            pltpu.make_async_copy(
                x_ref.at[pl.ds(start, size)],
                o_ref.at[pl.ds(start, size)],
                sem.at[k],
            )
            for k, (start, size) in enumerate(chunks)
        ]
        for c in copies:   # issue all DMAs so multiple engines overlap
            c.start()
        for c in copies:   # then drain
            c.wait()

    return kernel


def unflatten3d(x, size, materialize=False):
    """x: (B, ...) with prod(trailing dims) == C*H*W.  Returns (B, C, H, W)."""
    C, H, W = size
    B = x.shape[0]
    trailing = math.prod(x.shape[1:]) if len(x.shape) > 1 else 1
    assert trailing == C * H * W, f"flat dim {trailing} != prod(size) {C * H * W}"

    if not materialize:
        # Pure data-movement op on a contiguous buffer: the fastest kernel is
        # no kernel at all (metadata-only reshape, 0 HBM bytes moved).
        return x.reshape(B, C, H, W)

    itemsize = jnp.dtype(x.dtype).itemsize
    chunks = _row_chunks(B, trailing * itemsize)

    copied = pl.pallas_call(
        _make_hbm_copy_kernel(chunks),
        out_shape=jax.ShapeDtypeStruct(x.shape, x.dtype),
        in_specs=[pl.BlockSpec(memory_space=pl.ANY)],
        out_specs=pl.BlockSpec(memory_space=pl.ANY),
        scratch_shapes=[pltpu.SemaphoreType.DMA((len(chunks),))],
        cost_estimate=pl.CostEstimate(
            flops=0,
            transcendentals=0,
            bytes_accessed=2 * B * trailing * itemsize,
        ),
    )(x)

    # Metadata-only reshape to the NCHW target shape.
    return copied.reshape(B, C, H, W)


if __name__ == "__main__":
    key0, key1 = jax.random.split(jax.random.PRNGKey(0), 2)

    # Case 1: aligned shapes, f32 — runs the Pallas HBM->HBM DMA kernel.
    B, size = 2, (4, 16, 16)              # (C, H, W)
    D = size[0] * size[1] * size[2]
    x = jax.random.normal(key0, (B, D), dtype=jnp.float32)

    out = jax.block_until_ready(unflatten3d(x, size, materialize=True))
    ref = x.reshape(B, *size)
    assert out.shape == (B, *size), out.shape
    assert out.dtype == x.dtype
    assert bool(jnp.array_equal(out, ref))

    # Default fast path (no copy at all).
    out_fast = jax.block_until_ready(unflatten3d(x, size))
    assert bool(jnp.array_equal(out_fast, ref))

    # Case 2: ragged, non-128-aligned, bf16 — DMA copy is shape/dtype agnostic
    # (no padding, no masked tail, no dtype-specific sublane handling needed).
    B2, size2 = 3, (4, 5, 7)
    D2 = size2[0] * size2[1] * size2[2]
    x2 = jax.random.normal(key1, (B2, D2), dtype=jnp.bfloat16)
    out2 = jax.block_until_ready(unflatten3d(x2, size2, materialize=True))
    assert out2.shape == (B2, *size2)
    assert bool(jnp.array_equal(out2, x2.reshape(B2, *size2)))

    print("KERNEL_OK")
</pallas_src>

<mosaic_0001>
module attributes {stable_mosaic.version = 11 : i64} {
  func.func @kernel(%arg0: memref<2x1024xf32, #tpu.memory_space<any>>, %arg1: memref<2x1024xf32, #tpu.memory_space<any>>, %arg2: memref<1x!tpu.dma_semaphore, #tpu.memory_space<semaphore_mem>>) attributes {dimension_semantics = [], scalar_prefetch = 0 : i64, scratch_operands = 1 : i64, tpu.core_type = #tpu.core_type<tc>} {
    %c0_i32 = arith.constant 0 : i32
    %c0_i32_0 = arith.constant 0 : i32
    %c0_i32_1 = arith.constant 0 : i32
    %0 = tpu.memref_slice %arg0[%c0_i32_0, %c0_i32_1] : memref<2x1024xf32, #tpu.memory_space<any>> -> memref<2x1024xf32, #tpu.memory_space<any>>
    %c0_i32_2 = arith.constant 0 : i32
    %c0_i32_3 = arith.constant 0 : i32
    %1 = tpu.memref_slice %arg1[%c0_i32_2, %c0_i32_3] : memref<2x1024xf32, #tpu.memory_space<any>> -> memref<2x1024xf32, #tpu.memory_space<any>>
    %2 = tpu.memref_slice %arg2[%c0_i32] : memref<1x!tpu.dma_semaphore, #tpu.memory_space<semaphore_mem>> -> memref<1x!tpu.dma_semaphore, #tpu.memory_space<semaphore_mem>>
    %3 = tpu.memref_squeeze %2 : memref<1x!tpu.dma_semaphore, #tpu.memory_space<semaphore_mem>> -> memref<!tpu.dma_semaphore, #tpu.memory_space<semaphore_mem>>
    tpu.enqueue_dma source(%0 : memref<2x1024xf32, #tpu.memory_space<any>>) target(%1 : memref<2x1024xf32, #tpu.memory_space<any>>) target_semaphore(%3 : memref<!tpu.dma_semaphore, #tpu.memory_space<semaphore_mem>>)
    %c0_i32_4 = arith.constant 0 : i32
    %c0_i32_5 = arith.constant 0 : i32
    %c0_i32_6 = arith.constant 0 : i32
    %4 = tpu.memref_slice %arg0[%c0_i32_5, %c0_i32_6] : memref<2x1024xf32, #tpu.memory_space<any>> -> memref<2x1024xf32, #tpu.memory_space<any>>
    %c0_i32_7 = arith.constant 0 : i32
    %c0_i32_8 = arith.constant 0 : i32
    %5 = tpu.memref_slice %arg1[%c0_i32_7, %c0_i32_8] : memref<2x1024xf32, #tpu.memory_space<any>> -> memref<2x1024xf32, #tpu.memory_space<any>>
    %6 = tpu.memref_slice %arg2[%c0_i32_4] : memref<1x!tpu.dma_semaphore, #tpu.memory_space<semaphore_mem>> -> memref<1x!tpu.dma_semaphore, #tpu.memory_space<semaphore_mem>>
    %7 = tpu.memref_squeeze %6 : memref<1x!tpu.dma_semaphore, #tpu.memory_space<semaphore_mem>> -> memref<!tpu.dma_semaphore, #tpu.memory_space<semaphore_mem>>
    tpu.wait_dma2 semaphore(%7 : memref<!tpu.dma_semaphore, #tpu.memory_space<semaphore_mem>>) src(%4 : memref<2x1024xf32, #tpu.memory_space<any>>) dst(%5 : memref<2x1024xf32, #tpu.memory_space<any>>)
    return
  }
}

</mosaic_0001>

<bundles_post_ra>
// kernel: tpu_custom_call.1
= control target key start
LH: loop header
LB: loop body
LE: loop exit
PB: predicated region body
PF: predicated region fallthrough
CT: control target
= control target key end

     0   :  { %s35_s6 = smov [#allocation2]   ;;  %s36_s7 = smov [#allocation3]   ;;  %s54_s0 = inlined_call_operand.hbm [shape: f32[2,1024], index: 0, kind: input, shape index: {}]   ;;  %s55_s1 = inlined_call_operand.hbm [shape: f32[2,1024], index: 1, kind: output, shape index: {}]  }
   0x1   :  { %s37_s8 = smov 0  }
   0x2   :  { %18 = dma.general %s54_s0, 256, %s55_s1, %s35_s6, %s36_s7, [#allocation4], %s37_s8, 0  }
   0x3   :  { %33 = dma.done.wait [#allocation2], 256 }
   0x4   :  { %34 = vsyncadd [#allocation2], 4294967040 }
   0x5   :  { %23 = vsyncmov [#allocation2] }
   0x8   :  { %s24_s13 = vpop.sfrf %23 }
   0x9   :  { %p29_p0 = scmp.ne.s32.totalorder %s24_s13, 0 }
   0xb   :  { %28 = shalt.err (%p29_p0)  }

</bundles_post_ra>
